<compile_context>
chip_gen: v6e
topology: v6e:2x2x1
jax: 0.10.0
libtpu: 0.0.40
codegen_flags: <defaults>
</compile_context>

<pallas_src>
import functools

import jax
import jax.numpy as jnp
from jax import lax
from jax.experimental import pallas as pl
from jax.experimental.pallas import tpu as pltpu

KERNEL_SIZE = 3  # MedianBlur(kernel_size=3); no learned parameters in this module.


def _sort3(a, b, c):
    """Full sort of three arrays with 3 compare-exchanges -> (lo, mid, hi)."""
    a1 = jnp.minimum(a, b)
    b1 = jnp.maximum(a, b)
    b2 = jnp.minimum(b1, c)
    hi = jnp.maximum(b1, c)          # max of the three
    lo = jnp.minimum(a1, b2)         # min of the three
    mid = jnp.maximum(a1, b2)        # median of the three
    return lo, mid, hi


def _med3(a, b, c):
    """Median of three arrays (4 min/max ops)."""
    return jnp.maximum(jnp.minimum(a, b), jnp.minimum(jnp.maximum(a, b), c))


def _median3_strip(up, cur, dn):
    """3x3 zero-padded median for one row strip.

    up/cur/dn already carry the vertical zero padding (rows outside the image are
    zero). Horizontal zero padding is applied here via 1-column shifted copies.
    """
    dt = cur.dtype
    # Shared column sort: sorted triple of each column (6 min/max per pixel).
    lo, mid, hi = _sort3(up, cur, dn)

    zc = jnp.zeros(cur.shape[:2] + (1,), dt)

    def left(a):   # value of column x-1 (zero outside the image)
        return jnp.concatenate([zc, a[:, :, :-1]], axis=2)

    def right(a):  # value of column x+1 (zero outside the image)
        return jnp.concatenate([a[:, :, 1:], zc], axis=2)

    # median9 = med3( max of column-lows, med3 of column-mids, min of column-highs ).
    lo_max = jnp.maximum(jnp.maximum(left(lo), lo), right(lo))
    hi_min = jnp.minimum(jnp.minimum(left(hi), hi), right(hi))
    mid_med = _med3(left(mid), mid, right(mid))
    return _med3(lo_max, mid_med, hi_min)


def _median3_kernel(x_ref, o_ref, xpad_ref, *, H, W, S):
    """3x3 median over a (TB, H, W) block, zero-padded borders (kornia semantics)."""
    tb = x_ref.shape[0]
    dt = x_ref.dtype

    # Single zero-padded copy (1 pad row each side) in VMEM; padded row p holds
    # original row p-1, rows 0 and H+1 are the zero halo.
    zrow = jnp.zeros((tb, 1, W), dt)
    xpad_ref[:, 0:1, :] = zrow
    xpad_ref[:, H + 1:H + 2, :] = zrow
    xpad_ref[:, 1:H + 1, :] = x_ref[...]

    n_full = H // S
    tail = H - n_full * S

    def strip(r0, size):
        up = xpad_ref[:, pl.ds(r0, size), :]        # rows r0-1 .. r0+size-2 (0 outside)
        cur = xpad_ref[:, pl.ds(r0 + 1, size), :]   # rows r0   .. r0+size-1
        dn = xpad_ref[:, pl.ds(r0 + 2, size), :]    # rows r0+1 .. r0+size   (0 outside)
        o_ref[:, pl.ds(r0, size), :] = _median3_strip(up, cur, dn).astype(o_ref.dtype)

    if n_full >= 2:
        def body(si, carry):
            r0 = si * S
            if S % 8 == 0:
                r0 = pl.multiple_of(r0, 8)
            strip(r0, S)
            return carry
        lax.fori_loop(0, n_full, body, 0)
    elif n_full == 1:
        strip(0, S)
    if tail > 0:
        strip(n_full * S, tail)


def _median_rank_kernel(x_ref, o_ref, *, H, W, k):
    """General odd-k fallback: zero pad + partial bubble (selection) network.

    Only used when k != 3.  TODO(synk): strip-loop this path like the k == 3 one.
    """
    x = x_ref[...]
    tb = x.shape[0]
    dt = x.dtype
    p = (k - 1) // 2
    zr = jnp.zeros((tb, p, W), dt)
    xp = jnp.concatenate([zr, x, zr], axis=1)
    zc = jnp.zeros((tb, H + 2 * p, p), dt)
    xp = jnp.concatenate([zc, xp, zc], axis=2)

    vals = [xp[:, dy:dy + H, dx:dx + W] for dy in range(k) for dx in range(k)]
    n = k * k

    def cs(i, j):                       # compare-exchange: vals[i] <= vals[j] afterwards
        a, b = vals[i], vals[j]
        vals[i] = jnp.minimum(a, b)
        vals[j] = jnp.maximum(a, b)

    med_idx = (n - 1) // 2
    # Bubble the running maximum to the end of the shrinking prefix until the median
    # position is finalized (no int32 counters, ~n^2/2 CEs worst case).
    for last in range(n - 1, med_idx - 1, -1):
        for i in range(last):
            cs(i, i + 1)
    o_ref[...] = vals[med_idx].astype(o_ref.dtype)


def _vmem_budget():
    """(working-set budget for tile sizing, scoped-VMEM limit), both in bytes."""
    cap = 64 * 1024 * 1024  # conservative default = v7x physical VMEM per core
    try:
        info = pltpu.get_tpu_info()
        cap = int(getattr(info, "vmem_capacity_bytes", cap))
    except Exception:
        pass
    vmem_limit = min(cap * 3 // 4, 96 * 1024 * 1024)  # ~96 MiB on v5e/v6e, ~48 MiB on v7x
    budget = vmem_limit // 2
    return budget, vmem_limit


def median_blur(img, kernel_size=KERNEL_SIZE):
    """img: (B, C, H, W). Returns the median-blurred image, same shape/dtype."""
    if kernel_size % 2 == 0:
        kernel_size -= 1
    k = kernel_size
    if k <= 1:
        return img

    B, C, H, W = img.shape
    N = B * C
    x = img.reshape(N, H, W)

    itemsize = jnp.dtype(img.dtype).itemsize
    plane_bytes = H * W * itemsize
    budget, vmem_limit = _vmem_budget()

    # Planes per grid step:
    #  - memory: ~6 plane-sized resident arrays per plane of a block
    #    (in/out double-buffered = 4, padded scratch ~1, strip temporaries ~1),
    #  - pipelining: prefer >= 8 grid steps so both v7x TensorCores get >= 4 steps
    #    and BlockSpec double-buffering can hide the HBM DMA,
    #  - but never shrink blocks below ~0.5 MiB (per-step overhead / partial stores).
    tb_mem = max(1, budget // max(1, 6 * plane_bytes))
    tb_steps = max(1, N // 8)
    tb_minblock = max(1, (512 * 1024) // max(1, plane_bytes))
    tb = max(1, min(tb_mem, N, max(tb_steps, tb_minblock)))
    grid = pl.cdiv(N, tb)

    # Row-strip size for the in-kernel loop: keep ~12 strip-sized temporaries within
    # a few hundred KiB, strips 8..32 sublanes where possible.
    strip_bytes = 12 * tb * W * itemsize
    S = max(8, min(32, (256 * 1024) // max(1, strip_bytes)))
    S = (S // 8) * 8
    S = min(S, H)

    if k == 3:
        kern = functools.partial(_median3_kernel, H=H, W=W, S=S)
        scratch = [pltpu.VMEM((tb, H + 2, W), img.dtype)]
    else:
        kern = functools.partial(_median_rank_kernel, H=H, W=W, k=k)
        scratch = []

    extra = {}
    if hasattr(pl, "CostEstimate"):
        extra["cost_estimate"] = pl.CostEstimate(
            flops=24 * N * H * W,
            bytes_accessed=2 * N * H * W * itemsize,
            transcendentals=0,
        )

    out = pl.pallas_call(
        kern,
        out_shape=jax.ShapeDtypeStruct((N, H, W), img.dtype),
        grid=(grid,),
        in_specs=[pl.BlockSpec((tb, H, W), lambda i: (i, 0, 0))],
        out_specs=pl.BlockSpec((tb, H, W), lambda i: (i, 0, 0)),
        scratch_shapes=scratch,
        compiler_params=pltpu.CompilerParams(
            dimension_semantics=("parallel",),
            vmem_limit_bytes=int(vmem_limit),
        ),
        **extra,
    )(x)
    return out.reshape(B, C, H, W)


def _reference_median_blur(img, k):
    # Pure-JAX reference mirroring kornia: zero pad + per-pixel median of k*k window.
    if k % 2 == 0:
        k -= 1
    p = (k - 1) // 2
    B, C, H, W = img.shape
    xp = jnp.pad(img, ((0, 0), (0, 0), (p, p), (p, p)))
    patches = jnp.stack(
        [xp[:, :, dy:dy + H, dx:dx + W] for dy in range(k) for dx in range(k)],
        axis=2,
    )
    return jnp.median(patches, axis=2).astype(img.dtype)


if __name__ == "__main__":
    key = jax.random.PRNGKey(0)
    x = jax.random.uniform(key, (2, 4, 16, 16), dtype=jnp.float32)  # NCHW

    out = median_blur(x, KERNEL_SIZE)
    out = jax.block_until_ready(out)

    ref = _reference_median_blur(x, KERNEL_SIZE)
    assert out.shape == x.shape and out.dtype == x.dtype
    assert jnp.allclose(out, ref, atol=1e-6, rtol=1e-6), "mismatch vs reference"

    print("KERNEL_OK")
</pallas_src>

<mosaic_0001>
module attributes {stable_mosaic.version = 11 : i64} {
  func.func @_median3_kernel(%arg0: i32, %arg1: memref<8x16x16xf32, #tpu.memory_space<vmem>>, %arg2: memref<8x16x16xf32, #tpu.memory_space<vmem>>, %arg3: memref<8x18x16xf32, #tpu.memory_space<vmem>>) attributes {dimension_semantics = [#tpu.dimension_semantics<parallel>], iteration_bounds = array<i64: 1>, scalar_prefetch = 0 : i64, scratch_operands = 1 : i64, tpu.core_type = #tpu.core_type<tc>, window_params = [{transform_indices = @transform_0, window_bounds = array<i64: 8, 16, 16>}, {transform_indices = @transform_1, window_bounds = array<i64: 8, 16, 16>}]} {
    %cst = arith.constant 0.000000e+00 : f32
    %0 = vector.broadcast %cst : f32 to vector<8x1x16xf32>
    %c0 = arith.constant 0 : index
    %c0_0 = arith.constant 0 : index
    %c0_1 = arith.constant 0 : index
    %1 = vector.load %arg3[%c0, %c0_0, %c0_1] : memref<8x18x16xf32, #tpu.memory_space<vmem>>, vector<8x1x16xf32>
    tpu.vector_store %arg3[%c0, %c0_0, %c0_1], %0 {strides = array<i32>} : memref<8x18x16xf32, #tpu.memory_space<vmem>>, vector<8x1x16xf32>,
    %c0_2 = arith.constant 0 : index
    %c17 = arith.constant 17 : index
    %c0_3 = arith.constant 0 : index
    %2 = vector.load %arg3[%c0_2, %c17, %c0_3] : memref<8x18x16xf32, #tpu.memory_space<vmem>>, vector<8x1x16xf32>
    tpu.vector_store %arg3[%c0_2, %c17, %c0_3], %0 {strides = array<i32>} : memref<8x18x16xf32, #tpu.memory_space<vmem>>, vector<8x1x16xf32>,
    %c0_4 = arith.constant 0 : index
    %c0_5 = arith.constant 0 : index
    %c0_6 = arith.constant 0 : index
    %3 = vector.load %arg1[%c0_4, %c0_5, %c0_6] : memref<8x16x16xf32, #tpu.memory_space<vmem>>, vector<8x16x16xf32>
    %c0_7 = arith.constant 0 : index
    %c1 = arith.constant 1 : index
    %c0_8 = arith.constant 0 : index
    %4 = vector.load %arg3[%c0_7, %c1, %c0_8] : memref<8x18x16xf32, #tpu.memory_space<vmem>>, vector<8x16x16xf32>
    tpu.vector_store %arg3[%c0_7, %c1, %c0_8], %3 {strides = array<i32>} : memref<8x18x16xf32, #tpu.memory_space<vmem>>, vector<8x16x16xf32>,
    %c0_9 = arith.constant 0 : index
    %c0_10 = arith.constant 0 : index
    %c0_11 = arith.constant 0 : index
    %5 = vector.load %arg3[%c0_9, %c0_10, %c0_11] : memref<8x18x16xf32, #tpu.memory_space<vmem>>, vector<8x16x16xf32>
    %c0_12 = arith.constant 0 : index
    %c1_13 = arith.constant 1 : index
    %c0_14 = arith.constant 0 : index
    %6 = vector.load %arg3[%c0_12, %c1_13, %c0_14] : memref<8x18x16xf32, #tpu.memory_space<vmem>>, vector<8x16x16xf32>
    %c0_15 = arith.constant 0 : index
    %c2 = arith.constant 2 : index
    %c0_16 = arith.constant 0 : index
    %7 = vector.load %arg3[%c0_15, %c2, %c0_16] : memref<8x18x16xf32, #tpu.memory_space<vmem>>, vector<8x16x16xf32>
    %8 = arith.minimumf %5, %6 : vector<8x16x16xf32>
    %9 = arith.maximumf %5, %6 : vector<8x16x16xf32>
    %10 = arith.minimumf %9, %7 : vector<8x16x16xf32>
    %11 = arith.maximumf %9, %7 : vector<8x16x16xf32>
    %12 = arith.minimumf %8, %10 : vector<8x16x16xf32>
    %13 = arith.maximumf %8, %10 : vector<8x16x16xf32>
    %cst_17 = arith.constant 0.000000e+00 : f32
    %14 = vector.broadcast %cst_17 : f32 to vector<8x16x1xf32>
    %15 = vector.extract_strided_slice %12 {offsets = [0, 0, 0], sizes = [8, 16, 15], strides = [1, 1, 1]} : vector<8x16x16xf32> to vector<8x16x15xf32>
    %16 = tpu.concatenate %14, %15 in 2 : vector<8x16x1xf32>, vector<8x16x15xf32> -> vector<8x16x16xf32>
    %17 = arith.maximumf %16, %12 : vector<8x16x16xf32>
    %18 = vector.extract_strided_slice %12 {offsets = [0, 0, 1], sizes = [8, 16, 15], strides = [1, 1, 1]} : vector<8x16x16xf32> to vector<8x16x15xf32>
    %19 = tpu.concatenate %18, %14 in 2 : vector<8x16x15xf32>, vector<8x16x1xf32> -> vector<8x16x16xf32>
    %20 = arith.maximumf %17, %19 : vector<8x16x16xf32>
    %21 = vector.extract_strided_slice %11 {offsets = [0, 0, 0], sizes = [8, 16, 15], strides = [1, 1, 1]} : vector<8x16x16xf32> to vector<8x16x15xf32>
    %22 = tpu.concatenate %14, %21 in 2 : vector<8x16x1xf32>, vector<8x16x15xf32> -> vector<8x16x16xf32>
    %23 = arith.minimumf %22, %11 : vector<8x16x16xf32>
    %24 = vector.extract_strided_slice %11 {offsets = [0, 0, 1], sizes = [8, 16, 15], strides = [1, 1, 1]} : vector<8x16x16xf32> to vector<8x16x15xf32>
    %25 = tpu.concatenate %24, %14 in 2 : vector<8x16x15xf32>, vector<8x16x1xf32> -> vector<8x16x16xf32>
    %26 = arith.minimumf %23, %25 : vector<8x16x16xf32>
    %27 = vector.extract_strided_slice %13 {offsets = [0, 0, 0], sizes = [8, 16, 15], strides = [1, 1, 1]} : vector<8x16x16xf32> to vector<8x16x15xf32>
    %28 = tpu.concatenate %14, %27 in 2 : vector<8x16x1xf32>, vector<8x16x15xf32> -> vector<8x16x16xf32>
    %29 = vector.extract_strided_slice %13 {offsets = [0, 0, 1], sizes = [8, 16, 15], strides = [1, 1, 1]} : vector<8x16x16xf32> to vector<8x16x15xf32>
    %30 = tpu.concatenate %29, %14 in 2 : vector<8x16x15xf32>, vector<8x16x1xf32> -> vector<8x16x16xf32>
    %31 = arith.minimumf %28, %13 : vector<8x16x16xf32>
    %32 = arith.maximumf %28, %13 : vector<8x16x16xf32>
    %33 = arith.minimumf %32, %30 : vector<8x16x16xf32>
    %34 = arith.maximumf %31, %33 : vector<8x16x16xf32>
    %35 = arith.minimumf %20, %34 : vector<8x16x16xf32>
    %36 = arith.maximumf %20, %34 : vector<8x16x16xf32>
    %37 = arith.minimumf %36, %26 : vector<8x16x16xf32>
    %38 = arith.maximumf %35, %37 : vector<8x16x16xf32>
    %c0_18 = arith.constant 0 : index
    %c0_19 = arith.constant 0 : index
    %c0_20 = arith.constant 0 : index
    %39 = vector.load %arg2[%c0_18, %c0_19, %c0_20] : memref<8x16x16xf32, #tpu.memory_space<vmem>>, vector<8x16x16xf32>
    tpu.vector_store %arg2[%c0_18, %c0_19, %c0_20], %38 {strides = array<i32>} : memref<8x16x16xf32, #tpu.memory_space<vmem>>, vector<8x16x16xf32>,
    return
  }
  func.func @transform_0(%arg0: i32) -> (i32, i32, i32) {
    %c0_i32 = arith.constant 0 : i32
    %c0_i32_0 = arith.constant 0 : i32
    %c0_i32_1 = arith.constant 0 : i32
    return %arg0, %c0_i32, %c0_i32_0 : i32, i32, i32
  }
  func.func @transform_1(%arg0: i32) -> (i32, i32, i32) {
    %c0_i32 = arith.constant 0 : i32
    %c0_i32_0 = arith.constant 0 : i32
    %c0_i32_1 = arith.constant 0 : i32
    return %arg0, %c0_i32, %c0_i32_0 : i32, i32, i32
  }
}

</mosaic_0001>

<bundles_post_ra>
// kernel: tpu_custom_call.1
= control target key start
LH: loop header
LB: loop body
LE: loop exit
PB: predicated region body
PF: predicated region fallthrough
CT: control target
= control target key end

     0   :  { %6 = vsyncpa [#allocation4], 0  ;;  %s1842_s0 = inlined_call_operand.hbm [shape: f32[8,16,16], index: 0, kind: input, shape index: {}]   ;;  %s1843_s1 = inlined_call_operand.hbm [shape: f32[8,16,16], index: 1, kind: output, shape index: {}]  }
   0x1   :  { %7 = vsyncpa [#allocation5], 0  ;;  %s927_s6 = smov [#allocation3]  }
   0x2   :  { %s13_s7 = sshll.u32 %s927_s6, 4  ;;  %s14_s7 = int_to_ptr.vmem [resolvable:$true] %s13_s7 }
   0x3   :  { %s891_s8 = scalar_lea.vmem %s14_s7, 2048  ;;  %p896_p1 = scmp.lt.s32.totalorder %s14_s7, %s14_s7 }
   0x4   :  { %p892_p0 = scmp.ne.s32.totalorder %s14_s7, %s891_s8  ;;  %p897_p2 = scmp.lt.s32.totalorder %s891_s8, %s891_s8 }
   0x6   :  { %p898_p3 = por %p897_p2, %p896_p1 }
   0x8   :  { %p899_p4 = pnand %p898_p3, %p892_p0 }
   0xa   :  { %902 = shalt.err (!%p899_p4)
}
   0xb   :  { %s928_s9 = smov 128   ;;  %s929_s10 = smov 8  }
   0xc   :  { %19 = dma.hbm_to_vmem [thread:$0]  %s1842_s0, 2048, %s14_s7, [#allocation4], %s928_s9, %s928_s9, %s929_s10  }
   0xd   :  { %923 = dma.done.wait [#allocation4], 2048  }
   0xe   :  { %924 = vsyncadd [#allocation4], 4294965248  ;;  %vm23_vm0 = vcmask 122880   ;;  %v930_v0 = vmov 0.0   ;;  %vm56_vm1 = vcmask 130048   ;;  %v42_v1 = vld [vmem:[#allocation3 + $0x10] sm:$0xff] }
   0xf   :  { %25 = vst.msk [vmem:[#allocation2 + $0x18] sm:$0x1] %vm23_vm0, %v930_v0  ;;  %24 = vst.msk [vmem:[#allocation2] sm:$0x1] %vm23_vm0, %v930_v0  ;;  %v43_v2 = vld [vmem:[#allocation3 + $0x18] sm:$0xff]  ;;  %v40_v3 = vld [vmem:[#allocation3] sm:$0xff] }
  0x10   :  { %26 = vst.msk [vmem:[#allocation2 + $0x30] sm:$0x1] %vm23_vm0, %v930_v0  ;;  %27 = vst.msk [vmem:[#allocation2 + $0x48] sm:$0x1] %vm23_vm0, %v930_v0  ;;  %v41_v4 = vld [vmem:[#allocation3 + $0x8] sm:$0xff]  ;;  %v44_v5 = vld [vmem:[#allocation3 + $0x20] sm:$0xff] }
  0x11   :  { %28 = vst.msk [vmem:[#allocation2 + $0x60] sm:$0x1] %vm23_vm0, %v930_v0  ;;  %29 = vst.msk [vmem:[#allocation2 + $0x78] sm:$0x1] %vm23_vm0, %v930_v0  ;;  %v45_v6 = vld [vmem:[#allocation3 + $0x28] sm:$0xff]  ;;  %v46_v7 = vld [vmem:[#allocation3 + $0x30] sm:$0xff] }
  0x12   :  { %30 = vst.msk [vmem:[#allocation2 + $0x90] sm:$0x1] %vm23_vm0, %v930_v0  ;;  %31 = vst.msk [vmem:[#allocation2 + $0xa8] sm:$0x1] %vm23_vm0, %v930_v0  ;;  %v47_v8 = vld [vmem:[#allocation3 + $0x38] sm:$0xff]  ;;  %v48_v9 = vld [vmem:[#allocation3 + $0x40] sm:$0xff] }
  0x13   :  { %32 = vst.msk [vmem:[#allocation2 + $0x11] sm:$0x1] %vm23_vm0, %v930_v0  ;;  %33 = vst.msk [vmem:[#allocation2 + $0x29] sm:$0x1] %vm23_vm0, %v930_v0  ;;  %v49_v10 = vld [vmem:[#allocation3 + $0x48] sm:$0xff]  ;;  %v50_v11 = vld [vmem:[#allocation3 + $0x50] sm:$0xff] }
  0x14   :  { %34 = vst.msk [vmem:[#allocation2 + $0x41] sm:$0x1] %vm23_vm0, %v930_v0  ;;  %35 = vst.msk [vmem:[#allocation2 + $0x59] sm:$0x1] %vm23_vm0, %v930_v0  ;;  %v51_v12 = vld [vmem:[#allocation3 + $0x58] sm:$0xff]  ;;  %v52_v13 = vld [vmem:[#allocation3 + $0x60] sm:$0xff] }
  0x15   :  { %36 = vst.msk [vmem:[#allocation2 + $0x71] sm:$0x1] %vm23_vm0, %v930_v0  ;;  %37 = vst.msk [vmem:[#allocation2 + $0x89] sm:$0x1] %vm23_vm0, %v930_v0  ;;  %v53_v14 = vld [vmem:[#allocation3 + $0x68] sm:$0xff]  ;;  %v54_v15 = vld [vmem:[#allocation3 + $0x70] sm:$0xff] }
  0x16   :  { %38 = vst.msk [vmem:[#allocation2 + $0xa1] sm:$0x1] %vm23_vm0, %v930_v0  ;;  %39 = vst.msk [vmem:[#allocation2 + $0xb9] sm:$0x1] %vm23_vm0, %v930_v0  ;;  %v55_v16 = vld [vmem:[#allocation3 + $0x78] sm:$0xff]  ;;  %s931_s0 = smov 1  }
  0x17   :  { %59 = vst.msk [vmem:[#allocation2 + $0x19] sm:$0xff] %vm56_vm1, %v42_v1  ;;  %60 = vst.msk [vmem:[#allocation2 + $0x21] sm:$0xff] %vm56_vm1, %v43_v2  ;;  %s932_s13 = smov 127   ;;  %vm281_vm2 = vcmask 7168   ;;  %vm362_vm3 = vcmask 121856   ;;  %s933_s14 = smov [#allocation6]  }
  0x18   :  { %57 = vst.msk [vmem:[#allocation2 + $0x1] sm:$0xff] %vm56_vm1, %v40_v3  ;;  %58 = vst.msk [vmem:[#allocation2 + $0x9] sm:$0xff] %vm56_vm1, %v41_v4  ;;  %s864_s15 = sshll.u32 %s933_s14, 4  ;;  %s865_s15 = int_to_ptr.vmem [resolvable:$true] %s864_s15 }
  0x19   :  { %61 = vst.msk [vmem:[#allocation2 + $0x31] sm:$0xff] %vm56_vm1, %v44_v5  ;;  %62 = vst.msk [vmem:[#allocation2 + $0x39] sm:$0xff] %vm56_vm1, %v45_v6  ;;  %s903_s16 = scalar_lea.vmem %s865_s15, 2048  ;;  %p908_p6 = scmp.lt.s32.totalorder %s865_s15, %s865_s15 }
  0x1a   :  { %63 = vst.msk [vmem:[#allocation2 + $0x49] sm:$0xff] %vm56_vm1, %v46_v7  ;;  %64 = vst.msk [vmem:[#allocation2 + $0x51] sm:$0xff] %vm56_vm1, %v47_v8  ;;  %p904_p5 = scmp.ne.s32.totalorder %s865_s15, %s903_s16  ;;  %p909_p7 = scmp.lt.s32.totalorder %s903_s16, %s903_s16 }
  0x1b   :  { %65 = vst.msk [vmem:[#allocation2 + $0x61] sm:$0xff] %vm56_vm1, %v48_v9  ;;  %66 = vst.msk [vmem:[#allocation2 + $0x69] sm:$0xff] %vm56_vm1, %v49_v10 }
  0x1c   :  { %67 = vst.msk [vmem:[#allocation2 + $0x79] sm:$0xff] %vm56_vm1, %v50_v11  ;;  %68 = vst.msk [vmem:[#allocation2 + $0x81] sm:$0xff] %vm56_vm1, %v51_v12  ;;  %p910_p8 = por %p909_p7, %p908_p6 }
  0x1d   :  { %69 = vst.msk [vmem:[#allocation2 + $0x91] sm:$0xff] %vm56_vm1, %v52_v13  ;;  %70 = vst.msk [vmem:[#allocation2 + $0x99] sm:$0xff] %vm56_vm1, %v53_v14 }
  0x1e   :  { %71 = vst.msk [vmem:[#allocation2 + $0xa9] sm:$0xff] %vm56_vm1, %v54_v15  ;;  %72 = vst.msk [vmem:[#allocation2 + $0xb1] sm:$0xff] %vm56_vm1, %v55_v16  ;;  %v75_v17 = vld [vmem:[#allocation2 + $0x18] sm:$0xff]  ;;  %v76_v27 = vld [vmem:[#allocation2 + $0x20] sm:$0xff]  ;;  %p911_p9 = pnand %p910_p8, %p904_p5 }
  0x1f   :  { %v91_v18 = vld [vmem:[#allocation2 + $0x19] sm:$0xff]  ;;  %v89_v23 = vld [vmem:[#allocation2 + $0x1] sm:$0xff]  ;;  %v90_v34 = vld [vmem:[#allocation2 + $0x9] sm:$0xff] }
  0x20   :  { %v107_v19 = vld [vmem:[#allocation2 + $0x1a] sm:$0xff]  ;;  %v982_v20 = vmin.f32 %v75_v17, %v91_v18  ;;  %v139_v21 = vmax.f32 %v75_v17, %v91_v18  ;;  %v105_v24 = vld [vmem:[#allocation2 + $0x2] sm:$0xff]  ;;  %v994_v35 = vld [vmem:[#allocation2 + $0xa] sm:$0xff] }
  0x21   :  { %v73_v22 = vld [vmem:[#allocation2] sm:$0xff]  ;;  %v74_v33 = vld [vmem:[#allocation2 + $0x8] sm:$0xff]  ;;  %1907 = vst [vmem:[#allocation9_spill] sm:$0xff] %v994_v35  ;;  %v78_v40 = vld [vmem:[#allocation2 + $0x38] sm:$0xff] }
  0x22   :  { %v984_v25 = vmin.f32 %v73_v22, %v89_v23  ;;  %v137_v26 = vmax.f32 %v73_v22, %v89_v23  ;;  %v92_v28 = vld [vmem:[#allocation2 + $0x21] sm:$0xff]  ;;  %v988_v30 = vmin.f32 %v139_v21, %v107_v19  ;;  %v996_v36 = vmax.f32 %v139_v21, %v107_v19  ;;  %v94_v41 = vld [vmem:[#allocation2 + $0x39] sm:$0xff]  ;;  %v77_v47 = vld [vmem:[#allocation2 + $0x30] sm:$0xff] }
  0x23   :  { %v986_v29 = vld [vmem:[#allocation2 + $0x22] sm:$0xff]  ;;  %v990_v31 = vmin.f32 %v76_v27, %v92_v28  ;;  %v992_v32 = vmax.f32 %v76_v27, %v92_v28  ;;  %v1000_v38 = vmin.f32 %v74_v33, %v90_v34  ;;  %v1002_v39 = vmax.f32 %v74_v33, %v90_v34  ;;  %v1004_v42 = vld [vmem:[#allocation2 + $0x3a] sm:$0xff]  ;;  %v93_v48 = vld [vmem:[#allocation2 + $0x31] sm:$0xff] }
  0x24   :  { %1908 = vst [vmem:[#allocation10_spill] sm:$0xff] %v996_v36  ;;  %v998_v37 = vmin.f32 %v137_v26, %v105_v24  ;;  %v1006_v43 = vmax.f32 %v137_v26, %v105_v24  ;;  %v1010_v44 = vmin.f32 %v982_v20, %v988_v30  ;;  %v1016_v46 = vmax.f32 %v78_v40, %v94_v41  ;;  %v1018_v49 = vld [vmem:[#allocation2 + $0x32] sm:$0xff]  ;;  %v79_v61 = vld [vmem:[#allocation2 + $0x48] sm:$0xff]  ;;  %v81_v9 = vld [vmem:[#allocation2 + $0x60] sm:$0xff] }
  0x25   :  { %1909 = vst [vmem:[#allocation11_spill] sm:$0xff] %v1002_v39  ;;  %v1014_v45 = vmin.f32 %v992_v32, %v986_v29  ;;  %v1026_v51 = vmin.f32 %v1002_v39, %v994_v35  ;;  %v1028_v52 = vmin.f32 %v78_v40, %v94_v41  ;;  %v1030_v53 = vmax.f32 %v77_v47, %v93_v48  ;;  %v80_v54 = vld [vmem:[#allocation2 + $0x50] sm:$0xff]  ;;  %v82_v3 = vld [vmem:[#allocation2 + $0x68] sm:$0xff]  ;;  %v84_v16 = vld [vmem:[#allocation2 + $0x80] sm:$0xff] }
  0x26   :  { %1910 = vst [vmem:[#allocation12_spill] sm:$0xff] %v1006_v43  ;;  %1911 = vst [vmem:[#allocation13_spill] sm:$0xff] %v1010_v44  ;;  %v1022_v50 = vmin.f32 %v984_v25, %v998_v37  ;;  %v96_v55 = vld [vmem:[#allocation2 + $0x51] sm:$0xff]  ;;  %237 = vrot.lane.b32.xlu1 %v1010_v44, %s931_s0  ;;  %v1042_v58 = vmin.f32 %v1016_v46, %v1004_v42  ;;  %v1044_v59 = vmin.f32 %v77_v47, %v93_v48  ;;  %v95_v62 = vld [vmem:[#allocation2 + $0x49] sm:$0xff] }
  0x27   :  { %v1032_v56 = vld [vmem:[#allocation2 + $0x52] sm:$0xff]  ;;  %v1038_v57 = vmin.f32 %v990_v31, %v1014_v45  ;;  %v1046_v60 = vmax.f32 %v80_v54, %v96_v55  ;;  %v1048_v63 = vld [vmem:[#allocation2 + $0x4a] sm:$0xff]  ;;  %v1054_v0 = vmin.f32 %v1000_v38, %v1026_v51  ;;  %v1058_v1 = vmin.f32 %v1030_v53, %v1018_v49  ;;  %v97_v10 = vld [vmem:[#allocation2 + $0x61] sm:$0xff] }
  0x28   :  { %1912 = vst [vmem:[#allocation14_spill] sm:$0xff] %v1022_v50  ;;  %233 = vrot.lane.b32.xlu0 %v1022_v50, %s931_s0  ;;  %v1060_v2 = vmax.f32 %v79_v61, %v95_v62  ;;  %v98_v4 = vld [vmem:[#allocation2 + $0x69] sm:$0xff]  ;;  %v1064_v6 = vmin.f32 %v80_v54, %v96_v55  ;;  %v1066_v7 = vmin.f32 %v79_v61, %v95_v62  ;;  %v100_v17 = vld [vmem:[#allocation2 + $0x81] sm:$0xff]  ;;  %v83_v24 = vld [vmem:[#allocation2 + $0x78] sm:$0xff] }
  0x29   :  { %1913 = vst [vmem:[#allocation15_spill] sm:$0xff] %v1038_v57  ;;  %1914 = vst [vmem:[#allocation16_spill] sm:$0xff] %v1054_v0  ;;  %v1062_v5 = vld [vmem:[#allocation2 + $0x6a] sm:$0xff]  ;;  %v1068_v8 = vmax.f32 %v82_v3, %v98_v4  ;;  %v1070_v11 = vld [vmem:[#allocation2 + $0x62] sm:$0xff]  ;;  %v1074_v12 = vmin.f32 %v1028_v52, %v1042_v58  ;;  %v1078_v13 = vmin.f32 %v1046_v60, %v1032_v56 }
  0x2a   :  { %1915 = vst [vmem:[#allocation17_spill] sm:$0xff] %v1064_v6  ;;  %1916 = vst [vmem:[#allocation18_spill] sm:$0xff] %v1066_v7  ;;  %v1080_v14 = vmin.f32 %v82_v3, %v98_v4  ;;  %v145_v15 = vmax.f32 %v81_v9, %v97_v10  ;;  %v116_v18 = vld [vmem:[#allocation2 + $0x82] sm:$0xff]  ;;  %239 = vrot.lane.b32.xlu1 %v1038_v57, %s931_s0  ;;  %v1086_v19 = vmin.f32 %v1044_v59, %v1058_v1  ;;  %v99_v26 = vld [vmem:[#allocation2 + $0x79] sm:$0xff] }
  0x2b   :  { %1917 = vst [vmem:[#allocation19_spill] sm:$0xff] %v1074_v12  ;;  %v1090_v21 = vmin.f32 %v1060_v2, %v1048_v63  ;;  %v1094_v22 = vmin.f32 %v1068_v8, %v1062_v5  ;;  %v148_v23 = vmax.f32 %v84_v16, %v100_v17  ;;  %v115_v27 = vld [vmem:[#allocation2 + $0x7a] sm:$0xff]  ;;  %v1098_v28 = vmin.f32 %v81_v9, %v97_v10  ;;  %v85_v61 = vld [vmem:[#allocation2 + $0x90] sm:$0xff]  ;;  %v87_v35 = vld [vmem:[#allocation2 + $0xa8] sm:$0xff] }
  0x2c   :  { %1918 = vst [vmem:[#allocation20_spill] sm:$0xff] %v1080_v14  ;;  %1919 = vst [vmem:[#allocation21_spill] sm:$0xff] %v1086_v19  ;;  %235 = vrot.lane.b32.xlu0 %v1054_v0, %s931_s0  ;;  %v1101_v33 = vmin.f32 %v145_v15, %v1070_v11  ;;  %v1103_v34 = vmin.f32 %v84_v16, %v100_v17  ;;  %v147_v40 = vmax.f32 %v83_v24, %v99_v26  ;;  %v86_v41 = vld [vmem:[#allocation2 + $0x98] sm:$0xff]  ;;  %v88_v36 = vld [vmem:[#allocation2 + $0xb0] sm:$0xff] }
  0x2d   :  { %1920 = vst [vmem:[#allocation22_spill] sm:$0xff] %v1090_v21  ;;  %1921 = vst [vmem:[#allocation23_spill] sm:$0xff] %v1094_v22  ;;  %v102_v47 = vld [vmem:[#allocation2 + $0x99] sm:$0xff]  ;;  %v164_v48 = vmin.f32 %v148_v23, %v116_v18  ;;  %v131_v54 = vmin.f32 %v83_v24, %v99_v26  ;;  %v101_v62 = vld [vmem:[#allocation2 + $0x91] sm:$0xff]  ;;  %v1107_v3 = vmin.f32 %v1064_v6, %v1078_v13 }
  0x2e   :  { %1922 = vst [vmem:[#allocation24_spill] sm:$0xff] %v1098_v28  ;;  %v150_v55 = vmax.f32 %v86_v41, %v102_v47  ;;  %v163_v4 = vmin.f32 %v147_v40, %v115_v27  ;;  %v118_v9 = vld [vmem:[#allocation2 + $0x9a] sm:$0xff]  ;;  %v149_v10 = vmax.f32 %v85_v61, %v101_v62  ;;  %v104_v43 = vld [vmem:[#allocation2 + $0xb1] sm:$0xff]  ;;  %243 = vrot.lane.b32.xlu1 %v1074_v12, %s931_s0  ;;  %v103_v44 = vld [vmem:[#allocation2 + $0xa9] sm:$0xff] }
  0x2f   :  { %v1113_v16 = vmin.f32 %v1066_v7, %v1090_v21  ;;  %v1117_v17 = vmin.f32 %v1080_v14, %v1094_v22  ;;  %v134_v24 = vmin.f32 %v86_v41, %v102_v47  ;;  %v117_v26 = vld [vmem:[#allocation2 + $0x92] sm:$0xff]  ;;  %v152_v39 = vmax.f32 %v88_v36, %v104_v43  ;;  %v119_v22 = vld [vmem:[#allocation2 + $0xaa] sm:$0xff] }
  0x30   :  { %241 = vrot.lane.b32.xlu0 %v1086_v19, %s931_s0  ;;  %v1123_v57 = vmin.f32 %v1098_v28, %v1101_v33  ;;  %v1126_v12 = vmin.f32 %v1103_v34, %v164_v48  ;;  %v133_v50 = vmin.f32 %v85_v61, %v101_v62  ;;  %v120_v0 = vld [vmem:[#allocation2 + $0xb2] sm:$0xff]  ;;  %v151_v7 = vmax.f32 %v87_v35, %v103_v44 }
  0x31   :  { %v1128_v14 = vmin.f32 %v131_v54, %v163_v4  ;;  %v166_v41 = vmin.f32 %v150_v55, %v118_v9  ;;  %v136_v47 = vmin.f32 %v88_v36, %v104_v43  ;;  %v1132_v21 = vmax.f32 %v992_v32, %v986_v29 }
  0x32   :  { %v165_v19 = vmin.f32 %v149_v10, %v117_v26  ;;  %v135_v6 = vmin.f32 %v87_v35, %v103_v44  ;;  %v1136_v28 = vmax.f32 %v1016_v46, %v1004_v42  ;;  %v1140_v61 = vmax.f32 %v1030_v53, %v1018_v49  ;;  %247 = vrot.lane.b32.xlu1 %v1107_v3, %s931_s0 }
  0x33   :  { %1923 = vst [vmem:[#allocation25_spill] sm:$0xff] %v1132_v21  ;;  %v168_v62 = vmin.f32 %v152_v39, %v120_v0  ;;  %v1146_v36 = vmax.f32 %v1046_v60, %v1032_v56  ;;  %v1150_v29 = vmax.f32 %v1060_v2, %v1048_v63  ;;  %v1154_v32 = vmax.f32 %v1068_v8, %v1062_v5 }
  0x34   :  { %1924 = vst [vmem:[#allocation26_spill] sm:$0xff] %v1136_v28  ;;  %1925 = vst [vmem:[#allocation27_spill] sm:$0xff] %v1140_v61  ;;  %245 = vrot.lane.b32.xlu0 %v1113_v16, %s931_s0  ;;  %v167_v35 = vmin.f32 %v151_v7, %v119_v22  ;;  %v1159_v42 = vmax.f32 %v145_v15, %v1070_v11  ;;  %v1161_v43 = vmax.f32 %v148_v23, %v116_v18 }
  0x35   :  { %1926 = vst [vmem:[#allocation28_spill] sm:$0xff] %v1146_v36  ;;  %1927 = vst [vmem:[#allocation29_spill] sm:$0xff] %v1150_v29  ;;  %v1163_v44 = vmax.f32 %v147_v40, %v115_v27  ;;  %v1165_v46 = vmax.f32 %v150_v55, %v118_v9  ;;  %v1167_v49 = vmax.f32 %v149_v10, %v117_v26  ;;  %v1950_v27 = vld [vmem:[#allocation15_spill] sm:$0xff]  ;;  %v1954_v40 = vld [vmem:[#allocation9_spill] sm:$0xff] }
  0x36   :  { %1928 = vst [vmem:[#allocation30_spill] sm:$0xff] %v1154_v32  ;;  %1929 = vst [vmem:[#allocation31_spill] sm:$0xff] %v1159_v42  ;;  %v1169_v53 = vmax.f32 %v152_v39, %v120_v0  ;;  %v1171_v56 = vmax.f32 %v151_v7, %v119_v22  ;;  %v1175_v60 = vmax.f32 %v1000_v38, %v1026_v51  ;;  %251 = vrot.lane.b32.xlu1 %v1117_v17, %s931_s0  ;;  %v1956_v55 = vld [vmem:[#allocation12_spill] sm:$0xff] }
  0x37   :  { %1930 = vst [vmem:[#allocation32_spill] sm:$0xff] %v1161_v43  ;;  %1931 = vst [vmem:[#allocation33_spill] sm:$0xff] %v1163_v44  ;;  %v1179_v63 = vmax.f32 %v984_v25, %v998_v37  ;;  %v1183_v2 = vmax.f32 %v990_v31, %v1014_v45  ;;  %v1187_v5 = vmax.f32 %v982_v20, %v988_v30  ;;  %v1936_v25 = vld [vmem:[#allocation17_spill] sm:$0xff]  ;;  %v1937_v31 = vld [vmem:[#allocation22_spill] sm:$0xff] }
  0x38   :  { %1932 = vst [vmem:[#allocation34_spill] sm:$0xff] %v1165_v46  ;;  %1933 = vst [vmem:[#allocation35_spill] sm:$0xff] %v1167_v49  ;;  %v1193_v39 = vmax.f32 %v1028_v52, %v1042_v58  ;;  %v1197_v38 = vmax.f32 %v1044_v59, %v1058_v1  ;;  %v1201_v37 = vmax.f32 %v1936_v25, %v1078_v13  ;;  %v1938_v45 = vld [vmem:[#allocation18_spill] sm:$0xff]  ;;  %249 = vrot.lane.b32.xlu0 %v1123_v57, %s931_s0  ;;  %v1939_v20 = vld [vmem:[#allocation23_spill] sm:$0xff] }
  0x39   :  { %1934 = vst [vmem:[#allocation36_spill] sm:$0xff] %v1169_v53  ;;  %1935 = vst [vmem:[#allocation37_spill] sm:$0xff] %v1171_v56  ;;  %v1205_v51 = vmax.f32 %v1938_v45, %v1937_v31  ;;  %v1940_v30 = vld [vmem:[#allocation20_spill] sm:$0xff]  ;;  %v1218_v59 = vmax.f32 %v1103_v34, %v164_v48  ;;  %v1220_v1 = vmax.f32 %v131_v54, %v163_v4  ;;  %v1953_v34 = vld [vmem:[#allocation21_spill] sm:$0xff] }
  0x3a   :  { %v1211_v0 = vmax.f32 %v1940_v30, %v1939_v20  ;;  %v1941_v52 = vld [vmem:[#allocation24_spill] sm:$0xff]  ;;  %v1222_v7 = vmax.f32 %v134_v24, %v166_v41  ;;  %v1224_v8 = vmax.f32 %v133_v50, %v165_v19  ;;  %v1226_v11 = vmax.f32 %v136_v47, %v168_v62  ;;  %255 = vrot.lane.b32.xlu1 %v1126_v12, %s931_s0  ;;  %v1955_v48 = vld [vmem:[#allocation11_spill] sm:$0xff]  ;;  %v1957_v4 = vld [vmem:[#allocation10_spill] sm:$0xff] }
  0x3b   :  { %v1215_v58 = vmax.f32 %v1941_v52, %v1101_v33  ;;  %1942 = vst [vmem:[#allocation17_spill] sm:$0xff] %v1218_v59  ;;  %1943 = vst [vmem:[#allocation22_spill] sm:$0xff] %v1220_v1  ;;  %v1228_v13 = vmax.f32 %v135_v6, %v167_v35  ;;  %v1232_v15 = vmin.f32 %v134_v24, %v166_v41  ;;  %v1951_v33 = vld [vmem:[#allocation13_spill] sm:$0xff] }
  0x3c   :  { %1944 = vst [vmem:[#allocation18_spill] sm:$0xff] %v1222_v7  ;;  %1945 = vst [vmem:[#allocation23_spill] sm:$0xff] %v1224_v8  ;;  %253 = vrot.lane.b32.xlu0 %v1128_v14, %s931_s0  ;;  %v1236_v18 = vmin.f32 %v133_v50, %v165_v19  ;;  %v1240_v22 = vmin.f32 %v136_v47, %v168_v62  ;;  %v1244_v23 = vmin.f32 %v135_v6, %v167_v35  ;;  %v1948_v50 = vld [vmem:[#allocation16_spill] sm:$0xff]  ;;  %v1949_v19 = vld [vmem:[#allocation14_spill] sm:$0xff] }
  0x3d   :  { %1946 = vst [vmem:[#allocation20_spill] sm:$0xff] %v1226_v11  ;;  %1947 = vst [vmem:[#allocation24_spill] sm:$0xff] %v1228_v13  ;;  %v1952_v6 = vld [vmem:[#allocation19_spill] sm:$0xff]  ;;  %v1282_v54 = vmax.f32 %v1955_v48, %v1954_v40 }
  0x3e   :  { %259 = vrot.lane.b32.xlu1 %v1232_v15, %s931_s0 }
  0x40   :  { %257 = vrot.lane.b32.xlu0 %v1236_v18, %s931_s0 }
  0x42   :  { %263 = vrot.lane.b32.xlu1 %v1240_v22, %s931_s0 }
  0x44   :  { %261 = vrot.lane.b32.xlu0 %v1244_v23, %s931_s0 }
  0x46   :  { %316 = vrot.lane.b32.xlu1 %v1948_v50, %s932_s13 }
  0x48   :  { %314 = vrot.lane.b32.xlu0 %v1949_v19, %s932_s13 }
  0x4a   :  { %320 = vrot.lane.b32.xlu1 %v1950_v27, %s932_s13 }
  0x4c   :  { %318 = vrot.lane.b32.xlu0 %v1951_v33, %s932_s13 }
  0x4e   :  { %324 = vrot.lane.b32.xlu1 %v1952_v6, %s932_s13 }
  0x50   :  { %322 = vrot.lane.b32.xlu0 %v1953_v34, %s932_s13 }
  0x52   :  { %328 = vrot.lane.b32.xlu1 %v1107_v3, %s932_s13 }
  0x54   :  { %326 = vrot.lane.b32.xlu0 %v1113_v16, %s932_s13 }
  0x56   :  { %332 = vrot.lane.b32.xlu1 %v1117_v17, %s932_s13 }
  0x58   :  { %330 = vrot.lane.b32.xlu0 %v1123_v57, %s932_s13 }
  0x5a   :  { %336 = vrot.lane.b32.xlu1 %v1126_v12, %s932_s13 }
  0x5c   :  { %334 = vrot.lane.b32.xlu0 %v1128_v14, %s932_s13 }
  0x5e   :  { %340 = vrot.lane.b32.xlu1 %v1232_v15, %s932_s13 }
  0x60   :  { %338 = vrot.lane.b32.xlu0 %v1236_v18, %s932_s13 }
  0x62   :  { %344 = vrot.lane.b32.xlu1 %v1240_v22, %s932_s13 }
  0x64   :  { %342 = vrot.lane.b32.xlu0 %v1244_v23, %s932_s13 }
  0x66   :  { %413 = vrot.lane.b32.xlu1 %v1282_v54, %s931_s0 }
  0x68   :  { %411 = vrot.lane.b32.xlu0 %v1956_v55, %s931_s0 }
  0x6a   :  { %417 = vrot.lane.b32.xlu1 %v1132_v21, %s931_s0 }
  0x6c   :  { %415 = vrot.lane.b32.xlu0 %v1957_v4, %s931_s0 }
  0x6e   :  { %421 = vrot.lane.b32.xlu1 %v1136_v28, %s931_s0 }
  0x70   :  { %419 = vrot.lane.b32.xlu0 %v1140_v61, %s931_s0 }
  0x72   :  { %425 = vrot.lane.b32.xlu1 %v1146_v36, %s931_s0 }
  0x74   :  { %423 = vrot.lane.b32.xlu0 %v1150_v29, %s931_s0 }
  0x76   :  { %429 = vrot.lane.b32.xlu1 %v1154_v32, %s931_s0 }
  0x78   :  { %427 = vrot.lane.b32.xlu0 %v1159_v42, %s931_s0 }
  0x7a   :  { %433 = vrot.lane.b32.xlu1 %v1161_v43, %s931_s0 }
  0x7c   :  { %431 = vrot.lane.b32.xlu0 %v1163_v44, %s931_s0 }
  0x7e   :  { %437 = vrot.lane.b32.xlu1 %v1165_v46, %s931_s0 }
  0x80   :  { %435 = vrot.lane.b32.xlu0 %v1167_v49, %s931_s0 }
  0x82   :  { %441 = vrot.lane.b32.xlu1 %v1169_v53, %s931_s0 }
  0x84   :  { %439 = vrot.lane.b32.xlu0 %v1171_v56, %s931_s0 }
  0x86   :  { %493 = vrot.lane.b32.xlu1 %v1282_v54, %s932_s13 }
  0x88   :  { %491 = vrot.lane.b32.xlu0 %v1956_v55, %s932_s13 }
  0x8a   :  { %497 = vrot.lane.b32.xlu1 %v1132_v21, %s932_s13 }
  0x8c   :  { %495 = vrot.lane.b32.xlu0 %v1957_v4, %s932_s13 }
  0x8e   :  { %501 = vrot.lane.b32.xlu1 %v1136_v28, %s932_s13 }
  0x90   :  { %499 = vrot.lane.b32.xlu0 %v1140_v61, %s932_s13 }
  0x92   :  { %505 = vrot.lane.b32.xlu1 %v1146_v36, %s932_s13 }
  0x94   :  { %503 = vrot.lane.b32.xlu0 %v1150_v29, %s932_s13 }
  0x96   :  { %509 = vrot.lane.b32.xlu1 %v1154_v32, %s932_s13 }
  0x98   :  { %507 = vrot.lane.b32.xlu0 %v1159_v42, %s932_s13  ;;  %v238_v9 = vpop.permute.xlu1 %237 }
  0x99   :  { %v284_v28 = vsel %vm281_vm2, 0.0, %v238_v9 }
  0x9a   :  { %v234_v10 = vpop.permute.xlu0 %233  ;;  %513 = vrot.lane.b32.xlu1 %v1161_v43, %s932_s13 }
  0x9b   :  { %v282_v43 = vsel %vm281_vm2, 0.0, %v234_v10 }
  0x9c   :  { %511 = vrot.lane.b32.xlu0 %v1163_v44, %s932_s13  ;;  %v240_v24 = vpop.permute.xlu1 %239  ;;  %v298_v29 = vmax.f32 %v282_v43, %v1949_v19 }
  0x9d   :  { %v285_v36 = vsel %vm281_vm2, 0.0, %v240_v24 }
  0x9e   :  { %v236_v26 = vpop.permute.xlu0 %235  ;;  %589 = vrot.lane.b32.xlu1 %v1175_v60, %s931_s0  ;;  %v301_v43 = vmax.f32 %v285_v36, %v1950_v27 }
  0x9f   :  { %v283_v48 = vsel %vm281_vm2, 0.0, %v236_v26 }
  0xa0   :  { %587 = vrot.lane.b32.xlu0 %v1179_v63, %s931_s0  ;;  %v244_v41 = vpop.permute.xlu1 %243  ;;  %v299_v42 = vmax.f32 %v283_v48, %v1948_v50 }
  0xa1   :  { %v287_v19 = vsel %vm281_vm2, 0.0, %v244_v41 }
  0xa2   :  { %v242_v47 = vpop.permute.xlu0 %241  ;;  %593 = vrot.lane.b32.xlu1 %v1183_v2, %s931_s0 }
  0xa4   :  { %591 = vrot.lane.b32.xlu0 %v1187_v5, %s931_s0  ;;  %v248_v62 = vpop.permute.xlu1 %247 }
  0xa6   :  { %v246_v35 = vpop.permute.xlu0 %245  ;;  %597 = vrot.lane.b32.xlu1 %v1193_v39, %s931_s0 }
  0xa7   :  { %v288_v48 = vsel %vm281_vm2, 0.0, %v246_v35 }
  0xa8   :  { %595 = vrot.lane.b32.xlu0 %v1197_v38, %s931_s0  ;;  %v252_v25 = vpop.permute.xlu1 %251 }
  0xaa   :  { %v250_v31 = vpop.permute.xlu0 %249  ;;  %601 = vrot.lane.b32.xlu1 %v1201_v37, %s931_s0 }
  0xac   :  { %599 = vrot.lane.b32.xlu0 %v1205_v51, %s931_s0  ;;  %v1358_v45 = vpop.permute.xlu1 %255 }
  0xae   :  { %v1360_v20 = vpop.permute.xlu0 %253  ;;  %605 = vrot.lane.b32.xlu1 %v1211_v0, %s931_s0 }
  0xb0   :  { %603 = vrot.lane.b32.xlu0 %v1215_v58, %s931_s0  ;;  %v1366_v30 = vpop.permute.xlu1 %259 }
  0xb2   :  { %v1368_v52 = vpop.permute.xlu0 %257  ;;  %609 = vrot.lane.b32.xlu1 %v1218_v59, %s931_s0 }
  0xb4   :  { %607 = vrot.lane.b32.xlu0 %v1220_v1, %s931_s0  ;;  %v1374_v40 = vpop.permute.xlu1 %263 }
  0xb6   :  { %v1377_v44 = vpop.permute.xlu0 %261  ;;  %613 = vrot.lane.b32.xlu1 %v1222_v7, %s931_s0 }
  0xb8   :  { %611 = vrot.lane.b32.xlu0 %v1224_v8, %s931_s0  ;;  %v317_v32 = vpop.permute.xlu1 %316 }
  0xb9   :  { %v364_v26 = vsel %vm362_vm3, %v317_v32, 0.0  ;;  %v300_v32 = vmax.f32 %v284_v28, %v1951_v33  ;;  %v303_v28 = vmax.f32 %v287_v19, %v1952_v6  ;;  %v289_v33 = vsel %vm281_vm2, 0.0, %v248_v62 }
  0xba   :  { %v315_v61 = vpop.permute.xlu0 %314  ;;  %v1389_v10 = vmax.f32 %v299_v42, %v364_v26  ;;  %617 = vrot.lane.b32.xlu1 %v1226_v11, %s931_s0  ;;  %v305_v6 = vmax.f32 %v289_v33, %v1107_v3  ;;  %v304_v62 = vmax.f32 %v288_v48, %v1113_v16 }
  0xbb   :  { %v363_v4 = vsel %vm362_vm3, %v315_v61, 0.0  ;;  %v286_v61 = vsel %vm281_vm2, 0.0, %v242_v47 }
  0xbc   :  { %v1394_v21 = vmax.f32 %v298_v29, %v363_v4  ;;  %615 = vrot.lane.b32.xlu0 %v1228_v13, %s931_s0  ;;  %v321_v50 = vpop.permute.xlu1 %320  ;;  %v302_v27 = vmax.f32 %v286_v61, %v1953_v34 }
  0xbd   :  { %v366_v42 = vsel %vm362_vm3, %v321_v50, 0.0 }
  0xbe   :  { %1958 = vst [vmem:[#allocation16_spill] sm:$0xff] %v1394_v21  ;;  %v319_v9 = vpop.permute.xlu0 %318  ;;  %v1403_v24 = vmax.f32 %v301_v43, %v366_v42  ;;  %653 = vrot.lane.b32.xlu1 %v1175_v60, %s932_s13  ;;  %v290_v42 = vsel %vm281_vm2, 0.0, %v250_v31  ;;  %v293_v31 = vsel %vm281_vm2, 0.0, %v1358_v45  ;;  %v1978_v21 = vld [vmem:[#allocation27_spill] sm:$0xff] }
  0xbf   :  { %v365_v29 = vsel %vm362_vm3, %v319_v9, 0.0 }
  0xc0   :  { %1959 = vst [vmem:[#allocation14_spill] sm:$0xff] %v1403_v24  ;;  %v1408_v4 = vmax.f32 %v300_v32, %v365_v29  ;;  %651 = vrot.lane.b32.xlu0 %v1179_v63, %s932_s13  ;;  %v325_v36 = vpop.permute.xlu1 %324  ;;  %v291_v32 = vsel %vm281_vm2, 0.0, %v252_v25  ;;  %v306_v25 = vmax.f32 %v290_v42, %v1123_v57  ;;  %v309_v57 = vmax.f32 %v293_v31, %v1126_v12 }
  0xc1   :  { %v368_v41 = vsel %vm362_vm3, %v325_v36, 0.0  ;;  %v307_v3 = vmax.f32 %v291_v32, %v1117_v17  ;;  %v296_v42 = vsel %vm281_vm2, 0.0, %v1377_v44 }
  0xc2   :  { %1960 = vst [vmem:[#allocation15_spill] sm:$0xff] %v1408_v4  ;;  %v323_v47 = vpop.permute.xlu0 %322  ;;  %v1417_v26 = vmax.f32 %v303_v28, %v368_v41  ;;  %657 = vrot.lane.b32.xlu1 %v1183_v2, %s932_s13  ;;  %v1976_v4 = vld [vmem:[#allocation10_spill] sm:$0xff] }
  0xc3   :  { %v367_v43 = vsel %vm362_vm3, %v323_v47, 0.0 }
  0xc4   :  { %1961 = vst [vmem:[#allocation13_spill] sm:$0xff] %v1417_v26  ;;  %v1422_v50 = vmax.f32 %v302_v27, %v367_v43  ;;  %655 = vrot.lane.b32.xlu0 %v1187_v5, %s932_s13  ;;  %v329_v34 = vpop.permute.xlu1 %328  ;;  %v292_v27 = vsel %vm281_vm2, 0.0, %v1360_v20  ;;  %v295_v20 = vsel %vm281_vm2, 0.0, %v1366_v30 }
  0xc5   :  { %v370_v35 = vsel %vm362_vm3, %v329_v34, 0.0  ;;  %v308_v47 = vmax.f32 %v292_v27, %v1128_v14  ;;  %v311_v14 = vmax.f32 %v295_v20, %v1232_v15 }
  0xc6   :  { %1962 = vst [vmem:[#allocation19_spill] sm:$0xff] %v1422_v50  ;;  %v327_v19 = vpop.permute.xlu0 %326  ;;  %v1431_v9 = vmax.f32 %v305_v6, %v370_v35  ;;  %661 = vrot.lane.b32.xlu1 %v1193_v39, %s932_s13  ;;  %v294_v6 = vsel %vm281_vm2, 0.0, %v1368_v52  ;;  %v297_v52 = vsel %vm281_vm2, 0.0, %v1374_v40  ;;  %v1975_v50 = vld [vmem:[#allocation25_spill] sm:$0xff] }
  0xc7   :  { %v369_v61 = vsel %vm362_vm3, %v327_v19, 0.0  ;;  %v310_v32 = vmax.f32 %v294_v6, %v1236_v18  ;;  %v313_v18 = vmax.f32 %v297_v52, %v1240_v22 }
  0xc8   :  { %1963 = vst [vmem:[#allocation21_spill] sm:$0xff] %v1431_v9  ;;  %v1436_v29 = vmax.f32 %v304_v62, %v369_v61  ;;  %659 = vrot.lane.b32.xlu0 %v1197_v38, %s932_s13  ;;  %v333_v16 = vpop.permute.xlu1 %332 }
  0xc9   :  { %v372_v28 = vsel %vm362_vm3, %v333_v16, 0.0  ;;  %v312_v16 = vmax.f32 %v296_v42, %v1244_v23 }
  0xca   :  { %1964 = vst [vmem:[#allocation9_spill] sm:$0xff] %v1436_v29  ;;  %v331_v36 = vpop.permute.xlu0 %330  ;;  %v1447_v33 = vmax.f32 %v307_v3, %v372_v28  ;;  %665 = vrot.lane.b32.xlu1 %v1201_v37, %s932_s13 }
  0xcb   :  { %v371_v41 = vsel %vm362_vm3, %v331_v36, 0.0 }
  0xcc   :  { %1965 = vst [vmem:[#allocation11_spill] sm:$0xff] %v1447_v33  ;;  %v1452_v17 = vmax.f32 %v306_v25, %v371_v41  ;;  %663 = vrot.lane.b32.xlu0 %v1205_v51, %s932_s13  ;;  %v337_v45 = vpop.permute.xlu1 %336 }
  0xcd   :  { %v374_v48 = vsel %vm362_vm3, %v337_v45, 0.0 }
  0xce   :  { %1966 = vst [vmem:[#allocation12_spill] sm:$0xff] %v1452_v17  ;;  %v335_v43 = vpop.permute.xlu0 %334  ;;  %v1463_v34 = vmax.f32 %v309_v57, %v374_v48  ;;  %669 = vrot.lane.b32.xlu1 %v1211_v0, %s932_s13 }
  0xcf   :  { %v373_v62 = vsel %vm362_vm3, %v335_v43, 0.0 }
  0xd0   :  { %1967 = vst [vmem:[#allocation38_spill] sm:$0xff] %v1463_v34  ;;  %v1468_v12 = vmax.f32 %v308_v47, %v373_v62  ;;  %667 = vrot.lane.b32.xlu0 %v1215_v58, %s932_s13  ;;  %v341_v30 = vpop.permute.xlu1 %340 }
  0xd1   :  { %v376_v35 = vsel %vm362_vm3, %v341_v30, 0.0 }
  0xd2   :  { %1968 = vst [vmem:[#allocation39_spill] sm:$0xff] %v1468_v12  ;;  %v339_v19 = vpop.permute.xlu0 %338  ;;  %v1479_v61 = vmax.f32 %v311_v14, %v376_v35  ;;  %673 = vrot.lane.b32.xlu1 %v1218_v59, %s932_s13  ;;  %v1980_v59 = vld [vmem:[#allocation29_spill] sm:$0xff] }
  0xd3   :  { %v375_v3 = vsel %vm362_vm3, %v339_v19, 0.0 }
  0xd4   :  { %1969 = vst [vmem:[#allocation40_spill] sm:$0xff] %v1479_v61  ;;  %v1484_v15 = vmax.f32 %v310_v32, %v375_v3  ;;  %671 = vrot.lane.b32.xlu0 %v1220_v1, %s932_s13  ;;  %v345_v40 = vpop.permute.xlu1 %344  ;;  %v1977_v1 = vld [vmem:[#allocation26_spill] sm:$0xff] }
  0xd5   :  { %v378_v25 = vsel %vm362_vm3, %v345_v40, 0.0 }
  0xd6   :  { %1970 = vst [vmem:[#allocation41_spill] sm:$0xff] %v1484_v15  ;;  %v343_v44 = vpop.permute.xlu0 %342  ;;  %v1491_v31 = vmax.f32 %v313_v18, %v378_v25  ;;  %677 = vrot.lane.b32.xlu1 %v1222_v7, %s932_s13 }
  0xd7   :  { %v377_v28 = vsel %vm362_vm3, %v343_v44, 0.0 }
  0xd8   :  { %1971 = vst [vmem:[#allocation42_spill] sm:$0xff] %v1491_v31  ;;  %v1496_v36 = vmax.f32 %v312_v16, %v377_v28  ;;  %675 = vrot.lane.b32.xlu0 %v1224_v8, %s932_s13  ;;  %v414_v27 = vpop.permute.xlu1 %413 }
  0xda   :  { %1972 = vst [vmem:[#allocation43_spill] sm:$0xff] %v1496_v36  ;;  %v412_v22 = vpop.permute.xlu0 %411  ;;  %681 = vrot.lane.b32.xlu1 %v1226_v11, %s932_s13 }
  0xdb   :  { %v459_v12 = vsel %vm281_vm2, 0.0, %v412_v22 }
  0xdc   :  { %679 = vrot.lane.b32.xlu0 %v1228_v13, %s932_s13  ;;  %v418_v23 = vpop.permute.xlu1 %417  ;;  %v460_v13 = vsel %vm281_vm2, 0.0, %v414_v27 }
  0xdd   :  { %v462_v34 = vsel %vm281_vm2, 0.0, %v418_v23  ;;  %v476_v8 = vmin.f32 %v460_v13, %v1282_v54  ;;  %v475_v23 = vmin.f32 %v459_v12, %v1956_v55  ;;  %v1981_v12 = vld [vmem:[#allocation30_spill] sm:$0xff] }
  0xde   :  { %v416_v41 = vpop.permute.xlu0 %415  ;;  %517 = vrot.lane.b32.xlu1 %v1165_v46, %s932_s13  ;;  %v478_v26 = vmin.f32 %v462_v34, %v1975_v50 }
  0xdf   :  { %v461_v11 = vsel %vm281_vm2, 0.0, %v416_v41 }
  0xe0   :  { %515 = vrot.lane.b32.xlu0 %v1167_v49, %s932_s13  ;;  %v422_v57 = vpop.permute.xlu1 %421 }
  0xe1   :  { %v464_v33 = vsel %vm281_vm2, 0.0, %v422_v57 }
  0xe2   :  { %v420_v45 = vpop.permute.xlu0 %419  ;;  %521 = vrot.lane.b32.xlu1 %v1169_v53, %s932_s13  ;;  %v480_v24 = vmin.f32 %v464_v33, %v1977_v1  ;;  %v1984_v33 = vld [vmem:[#allocation33_spill] sm:$0xff] }
  0xe3   :  { %v463_v29 = vsel %vm281_vm2, 0.0, %v420_v45  ;;  %v477_v45 = vmin.f32 %v461_v11, %v1976_v4  ;;  %v1983_v4 = vld [vmem:[#allocation32_spill] sm:$0xff] }
  0xe4   :  { %519 = vrot.lane.b32.xlu0 %v1171_v56, %s932_s13  ;;  %v426_v47 = vpop.permute.xlu1 %425  ;;  %v479_v13 = vmin.f32 %v463_v29, %v1978_v21 }
  0xe5   :  { %v466_v7 = vsel %vm281_vm2, 0.0, %v426_v47 }
  0xe6   :  { %v424_v20 = vpop.permute.xlu0 %423 }
  0xe7   :  { %v465_v27 = vsel %vm281_vm2, 0.0, %v424_v20  ;;  %v1979_v20 = vld [vmem:[#allocation28_spill] sm:$0xff] }
  0xe8   :  { %v430_v48 = vpop.permute.xlu1 %429  ;;  %v481_v55 = vmin.f32 %v465_v27, %v1980_v59 }
  0xe9   :  { %v468_v22 = vsel %vm281_vm2, 0.0, %v430_v48  ;;  %v482_v48 = vmin.f32 %v466_v7, %v1979_v20 }
  0xea   :  { %v428_v43 = vpop.permute.xlu0 %427  ;;  %v484_v50 = vmin.f32 %v468_v22, %v1981_v12 }
  0xeb   :  { %v467_v41 = vsel %vm281_vm2, 0.0, %v428_v43 }
  0xec   :  { %v434_v6 = vpop.permute.xlu1 %433 }
  0xed   :  { %v470_v57 = vsel %vm281_vm2, 0.0, %v434_v6  ;;  %v1982_v6 = vld [vmem:[#allocation31_spill] sm:$0xff] }
  0xee   :  { %v432_v62 = vpop.permute.xlu0 %431  ;;  %v483_v11 = vmin.f32 %v467_v41, %v1982_v6  ;;  %v486_v1 = vmin.f32 %v470_v57, %v1983_v4 }
  0xef   :  { %v469_v54 = vsel %vm281_vm2, 0.0, %v432_v62 }
  0xf0   :  { %v438_v14 = vpop.permute.xlu1 %437  ;;  %v485_v62 = vmin.f32 %v469_v54, %v1984_v33 }
  0xf1   :  { %v1562_v7 = vsel %vm281_vm2, 0.0, %v438_v14 }
  0xf2   :  { %v436_v30 = vpop.permute.xlu0 %435 }
  0xf4   :  { %v1512_v32 = vpop.permute.xlu1 %441 }
  0xf5   :  { %1973 = vst [vmem:[#allocation44_spill] sm:$0xff] %v1512_v32 }
  0xf6   :  { %v1514_v52 = vpop.permute.xlu0 %439 }
  0xf7   :  { %1974 = vst [vmem:[#allocation45_spill] sm:$0xff] %v1514_v52 }
  0xf8   :  { %v494_v35 = vpop.permute.xlu1 %493 }
  0xf9   :  { %v540_v34 = vsel %vm362_vm3, %v494_v35, 0.0  ;;  %v1567_v35 = vsel %vm281_vm2, 0.0, %v436_v30 }
  0xfa   :  { %v492_v19 = vpop.permute.xlu0 %491  ;;  %v1569_v22 = vmin.f32 %v476_v8, %v540_v34 }
  0xfb   :  { %v539_v21 = vsel %vm362_vm3, %v492_v19, 0.0 }
  0xfc   :  { %v498_v42 = vpop.permute.xlu1 %497 }
  0xfd   :  { %v542_v29 = vsel %vm362_vm3, %v498_v42, 0.0  ;;  %v1575_v42 = vmin.f32 %v475_v23, %v539_v21 }
  0xfe   :  { %v496_v3 = vpop.permute.xlu0 %495  ;;  %v1577_v54 = vmin.f32 %v478_v26, %v542_v29 }
  0xff   :  { %v541_v59 = vsel %vm362_vm3, %v496_v3, 0.0 }
 0x100   :  { %v502_v18 = vpop.permute.xlu1 %501  ;;  %v1583_v30 = vmin.f32 %v477_v45, %v541_v59 }
 0x101   :  { %v544_v27 = vsel %vm362_vm3, %v502_v18, 0.0 }
 0x102   :  { %v500_v40 = vpop.permute.xlu0 %499  ;;  %v1585_v8 = vmin.f32 %v480_v24, %v544_v27 }
 0x103   :  { %v543_v41 = vsel %vm362_vm3, %v500_v40, 0.0 }
 0x104   :  { %v506_v16 = vpop.permute.xlu1 %505  ;;  %v1589_v20 = vmin.f32 %v479_v13, %v543_v41 }
 0x105   :  { %v546_v19 = vsel %vm362_vm3, %v506_v16, 0.0 }
 0x106   :  { %v504_v25 = vpop.permute.xlu0 %503  ;;  %v1591_v23 = vmin.f32 %v482_v48, %v546_v19 }
 0x107   :  { %v545_v14 = vsel %vm362_vm3, %v504_v25, 0.0 }
 0x108   :  { %v510_v44 = vpop.permute.xlu1 %509  ;;  %v1595_v12 = vmin.f32 %v481_v55, %v545_v14 }
 0x109   :  { %v548_v3 = vsel %vm362_vm3, %v510_v44, 0.0 }
 0x10a   :  { %v508_v28 = vpop.permute.xlu0 %507  ;;  %v1597_v44 = vmin.f32 %v484_v50, %v548_v3 }
 0x10b   :  { %v547_v40 = vsel %vm362_vm3, %v508_v28, 0.0 }
 0x10c   :  { %v514_v36 = vpop.permute.xlu1 %513  ;;  %v1603_v28 = vmin.f32 %v483_v11, %v547_v40 }
 0x10d   :  { %v550_v16 = vsel %vm362_vm3, %v514_v36, 0.0 }
 0x10e   :  { %v512_v31 = vpop.permute.xlu0 %511  ;;  %v1605_v36 = vmin.f32 %v486_v1, %v550_v16 }
 0x10f   :  { %v549_v26 = vsel %vm362_vm3, %v512_v31, 0.0 }
 0x110   :  { %v590_v56 = vpop.permute.xlu1 %589  ;;  %v1615_v48 = vmin.f32 %v485_v62, %v549_v26 }
 0x111   :  { %v636_v25 = vsel %vm281_vm2, 0.0, %v590_v56 }
 0x112   :  { %v588_v53 = vpop.permute.xlu0 %587 }
 0x113   :  { %v635_v45 = vsel %vm281_vm2, 0.0, %v588_v53  ;;  %v716_v53 = vmin.f32 %v636_v25, %v1175_v60 }
 0x114   :  { %v594_v15 = vpop.permute.xlu1 %593  ;;  %v715_v50 = vmin.f32 %v635_v45, %v1179_v63 }
 0x115   :  { %v638_v24 = vsel %vm281_vm2, 0.0, %v594_v15  ;;  %v732_v15 = vmax.f32 %v636_v25, %v1175_v60 }
 0x116   :  { %v1516_v61 = vpop.permute.xlu0 %591  ;;  %v718_v6 = vmin.f32 %v638_v24, %v1183_v2 }
 0x117   :  { %v637_v13 = vsel %vm281_vm2, 0.0, %v1516_v61  ;;  %v731_v61 = vmax.f32 %v635_v45, %v1179_v63 }
 0x118   :  { %v1518_v32 = vpop.permute.xlu1 %597  ;;  %v717_v11 = vmin.f32 %v637_v13, %v1187_v5  ;;  %v733_v4 = vmax.f32 %v637_v13, %v1187_v5 }
 0x119   :  { %v1611_v56 = vsel %vm281_vm2, 0.0, %v1518_v32  ;;  %v734_v32 = vmax.f32 %v638_v24, %v1183_v2 }
 0x11a   :  { %v1520_v52 = vpop.permute.xlu0 %595  ;;  %v720_v1 = vmin.f32 %v1611_v56, %v1193_v39  ;;  %v736_v21 = vmax.f32 %v1611_v56, %v1193_v39 }
 0x11b   :  { %v1621_v55 = vsel %vm281_vm2, 0.0, %v1520_v52 }
 0x11c   :  { %v1522_v49 = vpop.permute.xlu1 %601  ;;  %v719_v63 = vmin.f32 %v1621_v55, %v1197_v38  ;;  %v735_v33 = vmax.f32 %v1621_v55, %v1197_v38  ;;  %v1992_v38 = vld [vmem:[#allocation18_spill] sm:$0xff] }
 0x11d   :  { %v1633_v60 = vsel %vm281_vm2, 0.0, %v1522_v49 }
 0x11e   :  { %v1524_v46 = vpop.permute.xlu0 %599  ;;  %v722_v59 = vmin.f32 %v1633_v60, %v1201_v37 }
 0x11f   :  { %v1641_v2 = vsel %vm281_vm2, 0.0, %v1524_v46  ;;  %v738_v46 = vmax.f32 %v1633_v60, %v1201_v37  ;;  %v1994_v60 = vld [vmem:[#allocation21_spill] sm:$0xff] }
 0x120   :  { %v1529_v17 = vpop.permute.xlu1 %605  ;;  %v721_v19 = vmin.f32 %v1641_v2, %v1205_v51 }
 0x121   :  { %v1648_v49 = vsel %vm281_vm2, 0.0, %v1529_v17  ;;  %v737_v17 = vmax.f32 %v1641_v2, %v1205_v51  ;;  %v1995_v2 = vld [vmem:[#allocation9_spill] sm:$0xff] }
 0x122   :  { %v1534_v9 = vpop.permute.xlu0 %603 }
 0x123   :  { %v1657_v27 = vsel %vm281_vm2, 0.0, %v1534_v9  ;;  %v740_v9 = vmax.f32 %v1648_v49, %v1211_v0 }
 0x124   :  { %v1548_v47 = vpop.permute.xlu1 %609 }
 0x125   :  { %v1665_v14 = vsel %vm281_vm2, 0.0, %v1548_v47 }
 0x126   :  { %v1554_v43 = vpop.permute.xlu0 %607 }
 0x128   :  { %v1573_v57 = vpop.permute.xlu1 %613 }
 0x12a   :  { %v1581_v18 = vpop.permute.xlu0 %611 }
 0x12c   :  { %v1601_v34 = vpop.permute.xlu1 %617 }
 0x12e   :  { %v1613_v31 = vpop.permute.xlu0 %615 }
 0x130   :  { %v654_v52 = vpop.permute.xlu1 %653 }
 0x131   :  { %v700_v5 = vsel %vm362_vm3, %v654_v52, 0.0  ;;  %v1986_v52 = vld [vmem:[#allocation16_spill] sm:$0xff] }
 0x132   :  { %v652_v29 = vpop.permute.xlu0 %651  ;;  %v748_v62 = vmin.f32 %v732_v15, %v700_v5  ;;  %v1985_v15 = vld [vmem:[#allocation17_spill] sm:$0xff] }
 0x133   :  { %v699_v39 = vsel %vm362_vm3, %v652_v29, 0.0  ;;  %v1683_v29 = vsel %vm281_vm2, 0.0, %v1554_v43  ;;  %v1987_v43 = vld [vmem:[#allocation14_spill] sm:$0xff] }
 0x134   :  { %v747_v41 = vmin.f32 %v731_v61, %v699_v39  ;;  %v764_v3 = vmax.f32 %v716_v53, %v748_v62  ;;  %v658_v40 = vpop.permute.xlu1 %657 }
 0x135   :  { %v702_v25 = vsel %vm362_vm3, %v658_v40, 0.0 }
 0x136   :  { %v763_v26 = vmax.f32 %v715_v50, %v747_v41  ;;  %v656_v45 = vpop.permute.xlu0 %655  ;;  %v796_v13 = vmax.f32 %v1389_v10, %v764_v3  ;;  %v750_v56 = vmin.f32 %v734_v32, %v702_v25  ;;  %v780_v62 = vmin.f32 %v1389_v10, %v764_v3  ;;  %v1988_v10 = vld [vmem:[#allocation22_spill] sm:$0xff]  ;;  %v1989_v3 = vld [vmem:[#allocation15_spill] sm:$0xff] }
 0x137   :  { %v701_v47 = vsel %vm362_vm3, %v656_v45, 0.0 }
 0x138   :  { %v795_v5 = vmax.f32 %v1986_v52, %v763_v26  ;;  %v749_v50 = vmin.f32 %v733_v4, %v701_v47  ;;  %v812_v39 = vmin.f32 %v796_v13, %v1569_v22  ;;  %v766_v32 = vmax.f32 %v718_v6, %v750_v56  ;;  %v662_v41 = vpop.permute.xlu1 %661 }
 0x139   :  { %v779_v40 = vmin.f32 %v1986_v52, %v763_v26  ;;  %v704_v61 = vsel %vm362_vm3, %v662_v41, 0.0  ;;  %v742_v4 = vmax.f32 %v1665_v14, %v1985_v15  ;;  %v725_v22 = vmin.f32 %v1683_v29, %v1988_v10 }
 0x13a   :  { %v811_v25 = vmin.f32 %v795_v5, %v1575_v42  ;;  %v765_v45 = vmax.f32 %v717_v11, %v749_v50  ;;  %v660_v24 = vpop.permute.xlu0 %659  ;;  %v828_v47 = vmax.f32 %v780_v62, %v812_v39  ;;  %v798_v53 = vmax.f32 %v1987_v43, %v766_v32 }
 0x13b   :  { %v752_v16 = vmin.f32 %v736_v21, %v704_v61  ;;  %v703_v26 = vsel %vm362_vm3, %v660_v24, 0.0  ;;  %v782_v42 = vmin.f32 %v1987_v43, %v766_v32  ;;  %v741_v21 = vmax.f32 %v1683_v29, %v1988_v10 }
 0x13c   :  { %v827_v6 = vmax.f32 %v779_v40, %v811_v25  ;;  %v797_v13 = vmax.f32 %v1989_v3, %v765_v45  ;;  %844 = vst.msk [vmem:[#allocation6 + $0x8] sm:$0xff] %vm56_vm1, %v828_v47  ;;  %v814_v11 = vmin.f32 %v798_v53, %v1577_v54  ;;  %v751_v52 = vmin.f32 %v735_v33, %v703_v26  ;;  %v666_v5 = vpop.permute.xlu1 %665  ;;  %v1991_v25 = vld [vmem:[#allocation19_spill] sm:$0xff] }
 0x13d   :  { %v768_v56 = vmax.f32 %v720_v1, %v752_v16  ;;  %v781_v61 = vmin.f32 %v1989_v3, %v765_v45  ;;  %v706_v24 = vsel %vm362_vm3, %v666_v5, 0.0  ;;  %v1708_v39 = vsel %vm281_vm2, 0.0, %v1573_v57  ;;  %v1990_v1 = vld [vmem:[#allocation13_spill] sm:$0xff] }
 0x13e   :  { %843 = vst.msk [vmem:[#allocation6] sm:$0xff] %vm56_vm1, %v827_v6  ;;  %v813_v50 = vmin.f32 %v797_v13, %v1583_v30  ;;  %v664_v62 = vpop.permute.xlu0 %663  ;;  %v830_v54 = vmax.f32 %v782_v42, %v814_v11  ;;  %v767_v16 = vmax.f32 %v719_v63, %v751_v52  ;;  %v1716_v53 = vsel %vm281_vm2, 0.0, %v1581_v18  ;;  %v1993_v42 = vld [vmem:[#allocation23_spill] sm:$0xff] }
 0x13f   :  { %v800_v33 = vmax.f32 %v1990_v1, %v768_v56  ;;  %v754_v30 = vmin.f32 %v738_v46, %v706_v24  ;;  %v705_v41 = vsel %vm362_vm3, %v664_v62, 0.0  ;;  %v784_v57 = vmin.f32 %v1990_v1, %v768_v56 }
 0x140   :  { %v829_v32 = vmax.f32 %v781_v61, %v813_v50  ;;  %846 = vst.msk [vmem:[#allocation6 + $0x18] sm:$0xff] %vm56_vm1, %v830_v54  ;;  %v799_v45 = vmax.f32 %v1991_v25, %v767_v16  ;;  %v753_v47 = vmin.f32 %v737_v17, %v705_v41  ;;  %v670_v43 = vpop.permute.xlu1 %669  ;;  %v728_v55 = vmin.f32 %v1708_v39, %v1992_v38 }
 0x141   :  { %v816_v40 = vmin.f32 %v800_v33, %v1585_v8  ;;  %v783_v18 = vmin.f32 %v1991_v25, %v767_v16  ;;  %v770_v63 = vmax.f32 %v722_v59, %v754_v30  ;;  %v708_v46 = vsel %vm362_vm3, %v670_v43, 0.0  ;;  %v2001_v43 = vld [vmem:[#allocation20_spill] sm:$0xff] }
 0x142   :  { %845 = vst.msk [vmem:[#allocation6 + $0x10] sm:$0xff] %vm56_vm1, %v829_v32  ;;  %v668_v6 = vpop.permute.xlu0 %667  ;;  %v815_v8 = vmin.f32 %v799_v45, %v1589_v20  ;;  %v769_v17 = vmax.f32 %v721_v19, %v753_v47  ;;  %v756_v13 = vmin.f32 %v740_v9, %v708_v46  ;;  %v744_v26 = vmax.f32 %v1708_v39, %v1992_v38 }
 0x143   :  { %v832_v3 = vmax.f32 %v784_v57, %v816_v40  ;;  %v727_v37 = vmin.f32 %v1716_v53, %v1993_v42  ;;  %v802_v59 = vmax.f32 %v1994_v60, %v770_v63  ;;  %v707_v11 = vsel %vm362_vm3, %v668_v6, 0.0 }
 0x144   :  { %v1746_v20 = vsel %vm281_vm2, 0.0, %v1601_v34  ;;  %v831_v51 = vmax.f32 %v783_v18, %v815_v8  ;;  %v801_v19 = vmax.f32 %v1995_v2, %v769_v17  ;;  %v1996_v9 = vmin.f32 %v1648_v49, %v1211_v0  ;;  %v674_v52 = vpop.permute.xlu1 %673  ;;  %v1998_v0 = vld [vmem:[#allocation11_spill] sm:$0xff] }
 0x145   :  { %848 = vst.msk [vmem:[#allocation6 + $0x28] sm:$0xff] %vm56_vm1, %v832_v3  ;;  %v786_v5 = vmin.f32 %v1994_v60, %v770_v63  ;;  %v818_v61 = vmin.f32 %v802_v59, %v1591_v23  ;;  %v1997_v50 = vmax.f32 %v1657_v27, %v1215_v58  ;;  %v710_v34 = vsel %vm362_vm3, %v674_v52, 0.0 }
 0x146   :  { %v772_v56 = vmax.f32 %v1996_v9, %v756_v13  ;;  %v672_v62 = vpop.permute.xlu0 %671  ;;  %847 = vst.msk [vmem:[#allocation6 + $0x20] sm:$0xff] %vm56_vm1, %v831_v51  ;;  %v785_v54 = vmin.f32 %v1995_v2, %v769_v17  ;;  %v817_v1 = vmin.f32 %v801_v19, %v1595_v12  ;;  %v758_v33 = vmin.f32 %v742_v4, %v710_v34  ;;  %v2005_v51 = vld [vmem:[#allocation24_spill] sm:$0xff] }
 0x147   :  { %v755_v24 = vmin.f32 %v1997_v50, %v707_v11  ;;  %v834_v23 = vmax.f32 %v786_v5, %v818_v61  ;;  %v1999_v32 = vmin.f32 %v1657_v27, %v1215_v58  ;;  %v709_v41 = vsel %vm362_vm3, %v672_v62, 0.0  ;;  %v2002_v58 = vld [vmem:[#allocation12_spill] sm:$0xff]  ;;  %v2007_v50 = vld [vmem:[#allocation35_spill] sm:$0xff] }
 0x148   :  { %v804_v49 = vmax.f32 %v1998_v0, %v772_v56  ;;  %v788_v16 = vmin.f32 %v1998_v0, %v772_v56  ;;  %v833_v57 = vmax.f32 %v785_v54, %v817_v1  ;;  %v2000_v12 = vmin.f32 %v1665_v14, %v1985_v15  ;;  %v678_v47 = vpop.permute.xlu1 %677  ;;  %v2003_v15 = vld [vmem:[#allocation38_spill] sm:$0xff] }
 0x149   :  { %v771_v30 = vmax.f32 %v1999_v32, %v755_v24  ;;  %v757_v45 = vmin.f32 %v741_v21, %v709_v41  ;;  %v743_v4 = vmax.f32 %v1716_v53, %v1993_v42  ;;  %v746_v18 = vmax.f32 %v1746_v20, %v2001_v43  ;;  %850 = vst.msk [vmem:[#allocation6 + $0x38] sm:$0xff] %vm56_vm1, %v834_v23  ;;  %v2004_v42 = vld [vmem:[#allocation39_spill] sm:$0xff]  ;;  %v2006_v56 = vld [vmem:[#allocation34_spill] sm:$0xff]  ;;  %v2011_v32 = vld [vmem:[#allocation41_spill] sm:$0xff] }
 0x14a   :  { %v820_v40 = vmin.f32 %v804_v49, %v1597_v44  ;;  %v774_v25 = vmax.f32 %v2000_v12, %v758_v33  ;;  %v712_v63 = vsel %vm362_vm3, %v678_v47, 0.0  ;;  %v676_v46 = vpop.permute.xlu0 %675  ;;  %v649_v44 = vsel %vm281_vm2, 0.0, %v1613_v31  ;;  %849 = vst.msk [vmem:[#allocation6 + $0x30] sm:$0xff] %vm56_vm1, %v833_v57  ;;  %v2012_v57 = vld [vmem:[#allocation36_spill] sm:$0xff]  ;;  %v2013_v47 = vld [vmem:[#allocation37_spill] sm:$0xff] }
 0x14b   :  { %v803_v27 = vmax.f32 %v2002_v58, %v771_v30  ;;  %v773_v53 = vmax.f32 %v725_v22, %v757_v45  ;;  %v787_v6 = vmin.f32 %v2002_v58, %v771_v30  ;;  %v760_v8 = vmin.f32 %v744_v26, %v712_v63 }
 0x14c   :  { %v836_v14 = vmax.f32 %v788_v16, %v820_v40  ;;  %v806_v21 = vmax.f32 %v2003_v15, %v774_v25  ;;  %v711_v17 = vsel %vm362_vm3, %v676_v46, 0.0  ;;  %v790_v31 = vmin.f32 %v2003_v15, %v774_v25  ;;  %v682_v11 = vpop.permute.xlu1 %681  ;;  %v2014_v46 = vld [vmem:[#allocation42_spill] sm:$0xff] }
 0x14d   :  { %v819_v3 = vmin.f32 %v803_v27, %v1603_v28  ;;  %v805_v60 = vmax.f32 %v2004_v42, %v773_v53  ;;  %v759_v59 = vmin.f32 %v743_v4, %v711_v17  ;;  %v745_v29 = vmax.f32 %v649_v44, %v2005_v51 }
 0x14e   :  { %852 = vst.msk [vmem:[#allocation6 + $0x48] sm:$0xff] %vm56_vm1, %v836_v14  ;;  %v822_v13 = vmin.f32 %v806_v21, %v1605_v36  ;;  %v789_v22 = vmin.f32 %v2004_v42, %v773_v53  ;;  %v714_v28 = vsel %vm362_vm3, %v682_v11, 0.0  ;;  %v680_v26 = vpop.permute.xlu0 %679  ;;  %v776_v9 = vmax.f32 %v728_v55, %v760_v8  ;;  %v2008_v55 = vld [vmem:[#allocation44_spill] sm:$0xff]  ;;  %v2015_v53 = vld [vmem:[#allocation43_spill] sm:$0xff] }
 0x14f   :  { %v835_v10 = vmax.f32 %v787_v6, %v819_v3  ;;  %v821_v19 = vmin.f32 %v805_v60, %v1615_v48  ;;  %v762_v36 = vmin.f32 %v746_v18, %v714_v28  ;;  %v488_v52 = vmin.f32 %v1562_v7, %v2006_v56  ;;  %v2009_v7 = vld [vmem:[#allocation45_spill] sm:$0xff] }
 0x150   :  { %v838_v2 = vmax.f32 %v790_v31, %v822_v13  ;;  %v775_v5 = vmax.f32 %v727_v37, %v759_v59  ;;  %v713_v61 = vsel %vm362_vm3, %v680_v26, 0.0  ;;  %v487_v24 = vmin.f32 %v1567_v35, %v2007_v50  ;;  %v518_v38 = vpop.permute.xlu1 %517 }
 0x151   :  { %851 = vst.msk [vmem:[#allocation6 + $0x40] sm:$0xff] %vm56_vm1, %v835_v10  ;;  %v730_v34 = vmin.f32 %v1746_v20, %v2001_v43  ;;  %v837_v48 = vmax.f32 %v789_v22, %v821_v19  ;;  %v761_v39 = vmin.f32 %v745_v29, %v713_v61  ;;  %v474_v62 = vsel %vm281_vm2, 0.0, %v2008_v55  ;;  %v2010_v20 = vld [vmem:[#allocation40_spill] sm:$0xff] }
 0x152   :  { %854 = vst.msk [vmem:[#allocation6 + $0x58] sm:$0xff] %vm56_vm1, %v838_v2  ;;  %v473_v54 = vsel %vm281_vm2, 0.0, %v2009_v7  ;;  %v729_v37 = vmin.f32 %v649_v44, %v2005_v51  ;;  %v552_v1 = vsel %vm362_vm3, %v518_v38, 0.0  ;;  %v516_v0 = vpop.permute.xlu0 %515  ;;  %v808_v49 = vmax.f32 %v2010_v20, %v776_v9 }
 0x153   :  { %853 = vst.msk [vmem:[#allocation6 + $0x50] sm:$0xff] %vm56_vm1, %v837_v48  ;;  %v778_v35 = vmax.f32 %v730_v34, %v762_v36  ;;  %v568_v33 = vmin.f32 %v488_v52, %v552_v1  ;;  %v551_v23 = vsel %vm362_vm3, %v516_v0, 0.0  ;;  %v807_v30 = vmax.f32 %v2011_v32, %v775_v5 }
 0x154   :  { %v777_v16 = vmax.f32 %v729_v37, %v761_v39  ;;  %v567_v41 = vmin.f32 %v487_v24, %v551_v23  ;;  %v490_v40 = vmin.f32 %v474_v62, %v2012_v57  ;;  %v792_v12 = vmin.f32 %v2010_v20, %v776_v9  ;;  %v522_v45 = vpop.permute.xlu1 %521 }
 0x155   :  { %v824_v25 = vmin.f32 %v808_v49, %v568_v33  ;;  %v489_v4 = vmin.f32 %v473_v54, %v2013_v47  ;;  %v791_v43 = vmin.f32 %v2011_v32, %v775_v5  ;;  %v554_v58 = vsel %vm362_vm3, %v522_v45, 0.0 }
 0x156   :  { %v823_v18 = vmin.f32 %v807_v30, %v567_v41  ;;  %v520_v27 = vpop.permute.xlu0 %519  ;;  %v810_v44 = vmax.f32 %v2014_v46, %v778_v35  ;;  %v570_v14 = vmin.f32 %v490_v40, %v554_v58  ;;  %v809_v6 = vmax.f32 %v2015_v53, %v777_v16 }
 0x157   :  { %v840_v63 = vmax.f32 %v792_v12, %v824_v25  ;;  %v553_v15 = vsel %vm362_vm3, %v520_v27, 0.0  ;;  %v794_v8 = vmin.f32 %v2014_v46, %v778_v35  ;;  %v793_v31 = vmin.f32 %v2015_v53, %v777_v16 }
 0x158   :  { %v839_v21 = vmax.f32 %v791_v43, %v823_v18  ;;  %v569_v3 = vmin.f32 %v489_v4, %v553_v15  ;;  %v826_v17 = vmin.f32 %v810_v44, %v570_v14 }
 0x159   :  { %856 = vst.msk [vmem:[#allocation6 + $0x68] sm:$0xff] %vm56_vm1, %v840_v63 }
 0x15a   :  { %855 = vst.msk [vmem:[#allocation6 + $0x60] sm:$0xff] %vm56_vm1, %v839_v21  ;;  %v825_v13 = vmin.f32 %v809_v6, %v569_v3  ;;  %v842_v42 = vmax.f32 %v794_v8, %v826_v17 }
 0x15c   :  { %v841_v60 = vmax.f32 %v793_v31, %v825_v13  ;;  %858 = vst.msk [vmem:[#allocation6 + $0x78] sm:$0xff] %vm56_vm1, %v842_v42 }
 0x15e   :  { %857 = vst.msk [vmem:[#allocation6 + $0x70] sm:$0xff] %vm56_vm1, %v841_v60 }
 0x15f   :  { %914 = shalt.err (!%p911_p9)
}
 0x160   :  { %870 = dma.vmem_to_hbm [thread:$0]  %s865_s15, 2048, %s1843_s1, [#allocation5], %s928_s9, %s928_s9, %s929_s10  }
 0x161   :  { %925 = dma.done.wait [#allocation5], 2048  }
 0x162   :  { %926 = vsyncadd [#allocation5], 4294965248 }
 0x163   :  { %874 = vsyncpa [#allocation4], 1 }
 0x164   :  { %875 = vsyncpa [#allocation5], 1 }

</bundles_post_ra>
